<compile_context>
chip_gen: v7x
topology: tpu7x:2x2x1
jax: 0.10.0
libtpu: 0.0.40
codegen_flags: <defaults>
</compile_context>

<pallas_src>
import functools

import jax
import jax.numpy as jnp
from jax.experimental import pallas as pl
from jax.experimental.pallas import tpu as pltpu


def _round_up(n, m):
    return ((n + m - 1) // m) * m


def _resblock_kernel(depth, x_ref, w1_ref, b1_ref, w2_ref, b2_ref, o_ref):
    """One batch tile of: out = (Linear->ReLU->Linear) x depth (x) + x.

    x_ref:  (bm, Dp)        bf16  (lane-dense activation stream)
    w1_ref: (depth, Dp, Wp) bf16   b1_ref: (depth, Wp) f32
    w2_ref: (depth, Wp, Dp) bf16   b2_ref: (depth, Dp) f32
    o_ref:  (bm, Dp)        f32
    """
    x = x_ref[...].astype(jnp.float32)                    # residual kept in f32

    def layer(d, z):
        h = jnp.dot(z.astype(jnp.bfloat16), w1_ref[d],
                    preferred_element_type=jnp.float32)   # MXU, f32 accumulate
        h = jnp.maximum(h + b1_ref[pl.ds(d, 1), :], 0.0)  # bias + ReLU (f32)
        z = jnp.dot(h.astype(jnp.bfloat16), w2_ref[d],
                    preferred_element_type=jnp.float32)   # MXU, f32 accumulate
        return z + b2_ref[pl.ds(d, 1), :]

    if depth <= 4:
        # Short static depth -> full unroll keeps LLO scheduler visibility.
        z = x
        for d in range(depth):
            z = layer(d, z)
    else:
        # Deeper stacks: fori_loop (dynamic w*_ref[d] indexing is supported).
        z = jax.lax.fori_loop(0, depth, layer, x, unroll=True)

    o_ref[...] = (z + x).astype(o_ref.dtype)              # residual add


def prepare_params(w1, b1, w2, b2, *, lane=128):
    """Pad + cast resBlock parameters ONCE (hoisted out of the forward path).

    Zero padding propagates exactly through Linear->ReLU->Linear: padded weight
    rows/cols and padded bias entries are 0, so padded output columns stay 0.
    lane=256 is worth using on v6e/v7x when the real D/W are already >= 256
    (fills the 256x256 MXU); keep 128 on v5e.
    """
    depth, D, W = w1.shape
    Dp, Wp = _round_up(D, lane), _round_up(W, lane)
    f32, bf16 = jnp.float32, jnp.bfloat16
    w1p = jnp.zeros((depth, Dp, Wp), bf16).at[:, :D, :W].set(w1.astype(bf16))
    w2p = jnp.zeros((depth, Wp, Dp), bf16).at[:, :W, :D].set(w2.astype(bf16))
    b1p = jnp.zeros((depth, Wp), f32).at[:, :W].set(b1.astype(f32))
    b2p = jnp.zeros((depth, Dp), f32).at[:, :D].set(b2.astype(f32))
    return w1p, b1p, w2p, b2p


def resblock_pallas(x, params, *, block_m=512):
    """x: (B, D) float. params: output of prepare_params()."""
    w1p, b1p, w2p, b2p = params
    B, D = x.shape
    depth, Dp, Wp = w1p.shape
    f32, bf16 = jnp.float32, jnp.bfloat16

    # ---- batch tiling -------------------------------------------------------
    SUB = 16  # bf16 activation stream -> 16-row sublane packing
    bm_cap = max(SUB, min(block_m, _round_up(B, SUB)))
    if _round_up(B, SUB) >= 2 * SUB:
        # >= 2 grid steps so v7x's two TensorCores both get work on the
        # "parallel" axis; bm sized to minimize dead padded rows.
        n_tiles = max(2, -(-B // bm_cap))
        bm = _round_up(-(-B // n_tiles), SUB)
    else:
        bm = _round_up(max(B, 1), SUB)
    Bp = _round_up(B, bm)
    grid = (Bp // bm,)

    # ---- activations: bf16 at the HBM boundary ------------------------------
    if (Bp, Dp) == (B, D):
        xp = x.astype(bf16)                      # no pad pass needed
    else:
        xp = jnp.zeros((Bp, Dp), bf16).at[:B, :D].set(x.astype(bf16))

    # ---- explicit VMEM budget (default scoped limit is only 16/32 MiB) ------
    weight_bytes = (w1p.size + w2p.size) * 2 + (b1p.size + b2p.size) * 4
    act_bytes = 2 * bm * Dp * 2 + 2 * bm * Dp * 4   # double-buffered in/out
    interm_bytes = bm * (Wp + 3 * Dp) * 4           # loop intermediates
    vmem_limit = int(min(64 * 2 ** 20,              # v7x physical ceiling
                         max(32 * 2 ** 20,
                             weight_bytes + act_bytes + interm_bytes + (4 << 20))))

    cost = pl.CostEstimate(
        flops=int(4 * depth * Bp * Dp * Wp),        # 2 matmuls/layer * 2*M*K*N
        transcendentals=0,
        bytes_accessed=int(Bp * Dp * 2 + Bp * Dp * 4 + weight_bytes),
    )

    kernel = functools.partial(_resblock_kernel, depth)

    out_padded = pl.pallas_call(
        kernel,
        out_shape=jax.ShapeDtypeStruct((Bp, Dp), f32),
        grid_spec=pltpu.PrefetchScalarGridSpec(
            num_scalar_prefetch=0,
            grid=grid,
            in_specs=[
                # Batch-tiled activations (pipelined / double-buffered).
                pl.BlockSpec((bm, Dp), lambda i: (i, 0)),
                # Params: full arrays resident in VMEM, single-buffered.
                pl.BlockSpec(memory_space=pltpu.MemorySpace.VMEM),  # w1
                pl.BlockSpec(memory_space=pltpu.MemorySpace.VMEM),  # b1
                pl.BlockSpec(memory_space=pltpu.MemorySpace.VMEM),  # w2
                pl.BlockSpec(memory_space=pltpu.MemorySpace.VMEM),  # b2
            ],
            out_specs=pl.BlockSpec((bm, Dp), lambda i: (i, 0)),
        ),
        compiler_params=pltpu.CompilerParams(
            dimension_semantics=("parallel",),
            vmem_limit_bytes=vmem_limit,
        ),
        cost_estimate=cost,
    )(xp, w1p, b1p, w2p, b2p)

    if (Bp, Dp) == (B, D):
        return out_padded.astype(x.dtype)
    return out_padded[:B, :D].astype(x.dtype)


def resblock_reference(x, w1, b1, w2, b2):
    """Pure-JAX (f32) reference mirroring the PyTorch forward."""
    depth = w1.shape[0]
    z = x
    for d in range(depth):
        z = jnp.maximum(z @ w1[d] + b1[d], 0.0)
        z = z @ w2[d] + b2[d]
    return z + x


if __name__ == "__main__":
    # Small shapes consistent with the module (Linear layers act on last dim).
    B, input_dim, width, depth = 16, 32, 64, 2

    key = jax.random.PRNGKey(0)
    kx, kp = jax.random.split(key)

    # Deterministic parameter init (PyTorch-Linear-style uniform bounds).
    bound1 = 1.0 / (input_dim ** 0.5)   # fan_in = input_dim for first linear
    bound2 = 1.0 / (width ** 0.5)       # fan_in = width for second linear
    k1, k2, k3, k4 = jax.random.split(kp, 4)
    w1 = jax.random.uniform(k1, (depth, input_dim, width), jnp.float32,
                            -bound1, bound1)
    b1 = jax.random.uniform(k2, (depth, width), jnp.float32, -bound1, bound1)
    w2 = jax.random.uniform(k3, (depth, width, input_dim), jnp.float32,
                            -bound2, bound2)
    b2 = jax.random.uniform(k4, (depth, input_dim), jnp.float32,
                            -bound2, bound2)

    x = jax.random.normal(kx, (B, input_dim), jnp.float32)

    # Pad/cast params once, outside the per-forward path.
    params = prepare_params(w1, b1, w2, b2)

    out = resblock_pallas(x, params)
    out = jax.block_until_ready(out)

    ref = resblock_reference(x, w1, b1, w2, b2)
    assert out.shape == (B, input_dim)
    # bf16 MXU inputs + bf16 activation stream -> looser tolerance than pure f32.
    err = jnp.max(jnp.abs(out - ref))
    assert jnp.allclose(out, ref, atol=2e-2, rtol=2e-2), f"mismatch: {err}"

    print("KERNEL_OK")
</pallas_src>

<mosaic_0001>
module attributes {stable_mosaic.version = 11 : i64} {
  func.func @_resblock_kernel(%arg0: i32, %arg1: memref<16x128xbf16, #tpu.memory_space<vmem>>, %arg2: memref<2x128x128xbf16, #tpu.memory_space<vmem>>, %arg3: memref<2x128xf32, #tpu.memory_space<vmem>>, %arg4: memref<2x128x128xbf16, #tpu.memory_space<vmem>>, %arg5: memref<2x128xf32, #tpu.memory_space<vmem>>, %arg6: memref<16x128xf32, #tpu.memory_space<vmem>>) attributes {dimension_semantics = [#tpu.dimension_semantics<parallel>], iteration_bounds = array<i64: 1>, scalar_prefetch = 0 : i64, scratch_operands = 0 : i64, tpu.core_type = #tpu.core_type<tc>, window_params = [{transform_indices = @transform_0, window_bounds = array<i64: 16, 128>}, {pipeline_mode = #tpu.pipeline_mode<synchronous>, transform_indices = @transform_1, window_bounds = array<i64: 2, 128, 128>}, {pipeline_mode = #tpu.pipeline_mode<synchronous>, transform_indices = @transform_2, window_bounds = array<i64: 2, 128>}, {pipeline_mode = #tpu.pipeline_mode<synchronous>, transform_indices = @transform_3, window_bounds = array<i64: 2, 128, 128>}, {pipeline_mode = #tpu.pipeline_mode<synchronous>, transform_indices = @transform_4, window_bounds = array<i64: 2, 128>}, {transform_indices = @transform_5, window_bounds = array<i64: 16, 128>}]} {
    %c0 = arith.constant 0 : index
    %c0_0 = arith.constant 0 : index
    %0 = vector.load %arg1[%c0, %c0_0] : memref<16x128xbf16, #tpu.memory_space<vmem>>, vector<16x128xbf16>
    %1 = arith.extf %0 : vector<16x128xbf16> to vector<16x128xf32>
    %2 = arith.truncf %1 : vector<16x128xf32> to vector<16x128xbf16>
    %c0_1 = arith.constant 0 : index
    %c0_2 = arith.constant 0 : index
    %c0_3 = arith.constant 0 : index
    %3 = vector.load %arg2[%c0_1, %c0_2, %c0_3] : memref<2x128x128xbf16, #tpu.memory_space<vmem>>, vector<1x128x128xbf16>
    %4 = vector.shape_cast %3 : vector<1x128x128xbf16> to vector<128x128xbf16>
    %cst = arith.constant dense<0.000000e+00> : vector<16x128xf32>
    %5 = tpu.matmul %2, %4, %cst {dimension_numbers = #tpu.dot_dimension_numbers<[1], [0], [0], [1], [0, 0, 1, 1], [], []>} : vector<16x128xbf16>, vector<128x128xbf16>, vector<16x128xf32> -> vector<16x128xf32>
    %c0_4 = arith.constant 0 : index
    %c0_5 = arith.constant 0 : index
    %6 = vector.load %arg3[%c0_4, %c0_5] : memref<2x128xf32, #tpu.memory_space<vmem>>, vector<1x128xf32>
    %7 = vector.broadcast %6 : vector<1x128xf32> to vector<16x128xf32>
    %8 = arith.addf %5, %7 : vector<16x128xf32>
    %cst_6 = arith.constant 0.000000e+00 : f32
    %9 = vector.broadcast %cst_6 : f32 to vector<16x128xf32>
    %10 = arith.maximumf %8, %9 : vector<16x128xf32>
    %11 = arith.truncf %10 : vector<16x128xf32> to vector<16x128xbf16>
    %c0_7 = arith.constant 0 : index
    %c0_8 = arith.constant 0 : index
    %c0_9 = arith.constant 0 : index
    %12 = vector.load %arg4[%c0_7, %c0_8, %c0_9] : memref<2x128x128xbf16, #tpu.memory_space<vmem>>, vector<1x128x128xbf16>
    %13 = vector.shape_cast %12 : vector<1x128x128xbf16> to vector<128x128xbf16>
    %cst_10 = arith.constant dense<0.000000e+00> : vector<16x128xf32>
    %14 = tpu.matmul %11, %13, %cst_10 {dimension_numbers = #tpu.dot_dimension_numbers<[1], [0], [0], [1], [0, 0, 1, 1], [], []>} : vector<16x128xbf16>, vector<128x128xbf16>, vector<16x128xf32> -> vector<16x128xf32>
    %c0_11 = arith.constant 0 : index
    %c0_12 = arith.constant 0 : index
    %15 = vector.load %arg5[%c0_11, %c0_12] : memref<2x128xf32, #tpu.memory_space<vmem>>, vector<1x128xf32>
    %16 = vector.broadcast %15 : vector<1x128xf32> to vector<16x128xf32>
    %17 = arith.addf %14, %16 : vector<16x128xf32>
    %18 = arith.truncf %17 : vector<16x128xf32> to vector<16x128xbf16>
    %c1 = arith.constant 1 : index
    %c0_13 = arith.constant 0 : index
    %c0_14 = arith.constant 0 : index
    %19 = vector.load %arg2[%c1, %c0_13, %c0_14] : memref<2x128x128xbf16, #tpu.memory_space<vmem>>, vector<1x128x128xbf16>
    %20 = vector.shape_cast %19 : vector<1x128x128xbf16> to vector<128x128xbf16>
    %cst_15 = arith.constant dense<0.000000e+00> : vector<16x128xf32>
    %21 = tpu.matmul %18, %20, %cst_15 {dimension_numbers = #tpu.dot_dimension_numbers<[1], [0], [0], [1], [0, 0, 1, 1], [], []>} : vector<16x128xbf16>, vector<128x128xbf16>, vector<16x128xf32> -> vector<16x128xf32>
    %c1_16 = arith.constant 1 : index
    %c0_17 = arith.constant 0 : index
    %22 = vector.load %arg3[%c1_16, %c0_17] : memref<2x128xf32, #tpu.memory_space<vmem>>, vector<1x128xf32>
    %23 = vector.broadcast %22 : vector<1x128xf32> to vector<16x128xf32>
    %24 = arith.addf %21, %23 : vector<16x128xf32>
    %cst_18 = arith.constant 0.000000e+00 : f32
    %25 = vector.broadcast %cst_18 : f32 to vector<16x128xf32>
    %26 = arith.maximumf %24, %25 : vector<16x128xf32>
    %27 = arith.truncf %26 : vector<16x128xf32> to vector<16x128xbf16>
    %c1_19 = arith.constant 1 : index
    %c0_20 = arith.constant 0 : index
    %c0_21 = arith.constant 0 : index
    %28 = vector.load %arg4[%c1_19, %c0_20, %c0_21] : memref<2x128x128xbf16, #tpu.memory_space<vmem>>, vector<1x128x128xbf16>
    %29 = vector.shape_cast %28 : vector<1x128x128xbf16> to vector<128x128xbf16>
    %cst_22 = arith.constant dense<0.000000e+00> : vector<16x128xf32>
    %30 = tpu.matmul %27, %29, %cst_22 {dimension_numbers = #tpu.dot_dimension_numbers<[1], [0], [0], [1], [0, 0, 1, 1], [], []>} : vector<16x128xbf16>, vector<128x128xbf16>, vector<16x128xf32> -> vector<16x128xf32>
    %c1_23 = arith.constant 1 : index
    %c0_24 = arith.constant 0 : index
    %31 = vector.load %arg5[%c1_23, %c0_24] : memref<2x128xf32, #tpu.memory_space<vmem>>, vector<1x128xf32>
    %32 = vector.broadcast %31 : vector<1x128xf32> to vector<16x128xf32>
    %33 = arith.addf %30, %32 : vector<16x128xf32>
    %34 = arith.addf %33, %1 : vector<16x128xf32>
    %c0_25 = arith.constant 0 : index
    %c0_26 = arith.constant 0 : index
    %35 = vector.load %arg6[%c0_25, %c0_26] : memref<16x128xf32, #tpu.memory_space<vmem>>, vector<16x128xf32>
    tpu.vector_store %arg6[%c0_25, %c0_26], %34 {strides = array<i32>} : memref<16x128xf32, #tpu.memory_space<vmem>>, vector<16x128xf32>,
    return
  }
  func.func @transform_0(%arg0: i32) -> (i32, i32) {
    %c0_i32 = arith.constant 0 : i32
    %c0_i32_0 = arith.constant 0 : i32
    return %arg0, %c0_i32 : i32, i32
  }
  func.func @transform_1(%arg0: i32) -> (i32, i32, i32) {
    %c0_i32 = arith.constant 0 : i32
    %c0_i32_0 = arith.constant 0 : i32
    %c0_i32_1 = arith.constant 0 : i32
    %c0_i32_2 = arith.constant 0 : i32
    return %c0_i32, %c0_i32_0, %c0_i32_1 : i32, i32, i32
  }
  func.func @transform_2(%arg0: i32) -> (i32, i32) {
    %c0_i32 = arith.constant 0 : i32
    %c0_i32_0 = arith.constant 0 : i32
    %c0_i32_1 = arith.constant 0 : i32
    return %c0_i32, %c0_i32_0 : i32, i32
  }
  func.func @transform_3(%arg0: i32) -> (i32, i32, i32) {
    %c0_i32 = arith.constant 0 : i32
    %c0_i32_0 = arith.constant 0 : i32
    %c0_i32_1 = arith.constant 0 : i32
    %c0_i32_2 = arith.constant 0 : i32
    return %c0_i32, %c0_i32_0, %c0_i32_1 : i32, i32, i32
  }
  func.func @transform_4(%arg0: i32) -> (i32, i32) {
    %c0_i32 = arith.constant 0 : i32
    %c0_i32_0 = arith.constant 0 : i32
    %c0_i32_1 = arith.constant 0 : i32
    return %c0_i32, %c0_i32_0 : i32, i32
  }
  func.func @transform_5(%arg0: i32) -> (i32, i32) {
    %c0_i32 = arith.constant 0 : i32
    %c0_i32_0 = arith.constant 0 : i32
    return %arg0, %c0_i32 : i32, i32
  }
}

</mosaic_0001>

<bundles_post_ra>
// kernel: tpu_custom_call.1
= control target key start
LH: loop header
LB: loop body
LE: loop exit
PB: predicated region body
PF: predicated region fallthrough
CT: control target
= control target key end

     0   :  { %10 = vsyncpa [#allocation3], 0  ;;  %s996_s0 = inlined_call_operand.hbm [shape: bf16[16,128], index: 0, kind: input, shape index: {}]   ;;  %s997_s1 = inlined_call_operand.hbm [shape: bf16[2,128,128], index: 1, kind: input, shape index: {}]   ;;  %s998_s2 = inlined_call_operand.vmem [shape: f32[2,128], index: 2, kind: input, shape index: {}]   ;;  %s999_s3 = inlined_call_operand.hbm [shape: bf16[2,128,128], index: 3, kind: input, shape index: {}]   ;;  %s1000_s4 = inlined_call_operand.vmem [shape: f32[2,128], index: 4, kind: input, shape index: {}]   ;;  %s1001_s5 = inlined_call_operand.hbm [shape: f32[16,128], index: 5, kind: output, shape index: {}]  }
   0x1   :  { %11 = vsyncpa [#allocation6], 0 }
   0x2   :  { %12 = vsyncpa [#allocation4], 0  ;;  %s835_s18 = smov [#allocation5]   ;;  %s836_s20 = smov [#allocation2]  }
   0x3   :  { %s30_s19 = sshll.u32 %s835_s18, 4  ;;  %s18_s21 = sshll.u32 %s836_s20, 4  ;;  %s31_s19 = int_to_ptr.vmem [resolvable:$true] %s30_s19  ;;  %s875_s21 = int_to_ptr.vmem [resolvable:$true] %s18_s21 }
   0x4   :  { %s741_s24 = scalar_lea.hbm %s997_s1, 2048 }
   0x5   :  { %p742_p0 = scmp.ne.s32.totalorder %s997_s1, %s741_s24  ;;  %p745_p1 = scmp.lt.u32.totalorder %s741_s24, %s997_s1 }
   0x7   :  { %p747_p2 = pnand %p745_p1, %p742_p0 }
   0x9   :  { %750 = shalt.err (!%p747_p2)
}
   0xa   :  { %s751_s29 = scalar_lea.vmem %s31_s19, 2048  ;;  %p756_p4 = scmp.lt.s32.totalorder %s31_s19, %s31_s19 }
   0xb   :  { %p752_p3 = scmp.ne.s32.totalorder %s31_s19, %s751_s29  ;;  %p757_p5 = scmp.lt.s32.totalorder %s751_s29, %s751_s29 }
   0xd   :  { %p758_p6 = por %p757_p5, %p756_p4 }
   0xf   :  { %p759_p7 = pnand %p758_p6, %p752_p3 }
  0x11   :  { %762 = shalt.err (!%p759_p7)
}
  0x12   :  { %s837_s30 = smov 64   ;;  %s838_s6 = smov 4  }
  0x13   :  { %36 = dma.hbm_to_vmem [thread:$0]  %s997_s1, 2048, %s31_s19, [#allocation6], %s837_s30, %s837_s30, %s838_s6  }
  0x14   :  { %s763_s11 = scalar_lea.hbm %s996_s0, 128 }
  0x15   :  { %p764_p8 = scmp.ne.s32.totalorder %s996_s0, %s763_s11  ;;  %p767_p9 = scmp.lt.u32.totalorder %s763_s11, %s996_s0 }
  0x17   :  { %p769_p10 = pnand %p767_p9, %p764_p8 }
  0x19   :  { %772 = shalt.err (!%p769_p10)
}
  0x1a   :  { %s773_s16 = scalar_lea.vmem %s875_s21, 128  ;;  %p778_p12 = scmp.lt.s32.totalorder %s875_s21, %s875_s21 }
  0x1b   :  { %p774_p11 = scmp.ne.s32.totalorder %s875_s21, %s773_s16  ;;  %p779_p13 = scmp.lt.s32.totalorder %s773_s16, %s773_s16 }
  0x1d   :  { %p780_p0 = por %p779_p13, %p778_p12 }
  0x1f   :  { %p781_p1 = pnand %p780_p0, %p774_p11 }
  0x21   :  { %784 = shalt.err (!%p781_p1)
}
  0x22   :  { %24 = dma.hbm_to_vmem [thread:$0]  %s996_s0, 128, %s875_s21, [#allocation3], %s837_s30, %s837_s30, %s838_s6  }
  0x23   :  { %s839_s18 = smov [#allocation7]   ;;  %s785_s23 = scalar_lea.hbm %s999_s3, 2048 }
  0x24   :  { %s44_s19 = sshll.u32 %s839_s18, 4  ;;  %p786_p2 = scmp.ne.s32.totalorder %s999_s3, %s785_s23  ;;  %s45_s19 = int_to_ptr.vmem [resolvable:$true] %s44_s19 }
  0x25   :  { %p789_p3 = scmp.lt.u32.totalorder %s785_s23, %s999_s3 }
  0x27   :  { %p791_p4 = pnand %p789_p3, %p786_p2 }
  0x29   :  { %794 = shalt.err (!%p791_p4)
}
  0x2a   :  { %s795_s28 = scalar_lea.vmem %s45_s19, 2048  ;;  %p800_p6 = scmp.lt.s32.totalorder %s45_s19, %s45_s19 }
  0x2b   :  { %p796_p5 = scmp.ne.s32.totalorder %s45_s19, %s795_s28  ;;  %p801_p7 = scmp.lt.s32.totalorder %s795_s28, %s795_s28 }
  0x2d   :  { %p802_p8 = por %p801_p7, %p800_p6 }
  0x2f   :  { %p803_p9 = pnand %p802_p8, %p796_p5 }
  0x31   :  { %806 = shalt.err (!%p803_p9)
}
  0x32   :  { %50 = dma.hbm_to_vmem [thread:$0]  %s999_s3, 2048, %s45_s19, [#allocation6], %s837_s30, %s837_s30, %s838_s6  }
  0x33   :  { %829 = dma.done.wait [#allocation3], 128  }
  0x34   :  { %830 = vsyncadd [#allocation3], 4294967168 }
  0x35   :  { %831 = dma.done.wait [#allocation6], 4096  }
  0x36   :  { %832 = vsyncadd [#allocation6], 4294963200  ;;  %v840_v0 = vmov 0.0   ;;  %vm841_vm0 = vmmov 0   ;;  %v707_v1 = vld [vmem:[#allocation5] sm:$0xff]   ;;  %v708_v2 = vld [vmem:[#allocation5 + $0x8] sm:$0xff]  }
  0x37   :  { %617 = vmatprep.subr.bf16.mxu0 %v840_v0  ;;  %633 = vmatprep.mubr.msk.bf16.mxu0 %vm841_vm0, %v840_v0  ;;  %v709_v3 = vld [vmem:[#allocation5 + $0x10] sm:$0xff]   ;;  %v716_v4 = vld [vmem:[#allocation7] sm:$0xff]   ;;  %v710_v5 = vld [vmem:[#allocation5 + $0x18] sm:$0xff]  }
  0x38   :  { %637 = vmatprep.subr.bf16.mxu1 %v840_v0  ;;  %653 = vmatprep.mubr.msk.bf16.mxu1 %vm841_vm0, %v840_v0  ;;  %v717_v6 = vld [vmem:[#allocation7 + $0x8] sm:$0xff]   ;;  %v711_v7 = vld [vmem:[#allocation5 + $0x20] sm:$0xff]   ;;  %v718_v8 = vld [vmem:[#allocation7 + $0x10] sm:$0xff]  }
  0x39   :  { %618 = vmatpush3.bf16.msra.mxu0 %v707_v1  ;;  %638 = vmatpush3.bf16.msra.mxu1 %v716_v4  ;;  %v712_v9 = vld [vmem:[#allocation5 + $0x28] sm:$0xff]   ;;  %v719_v10 = vld [vmem:[#allocation7 + $0x18] sm:$0xff]   ;;  %v713_v11 = vld [vmem:[#allocation5 + $0x30] sm:$0xff]  }
  0x3a   :  { %619 = vmatprep.subr.bf16.mxu0 %v840_v0  ;;  %639 = vmatprep.subr.bf16.mxu1 %v840_v0  ;;  %v720_v12 = vld [vmem:[#allocation7 + $0x20] sm:$0xff]   ;;  %v714_v13 = vld [vmem:[#allocation5 + $0x38] sm:$0xff]   ;;  %v721_v15 = vld [vmem:[#allocation7 + $0x28] sm:$0xff]  }
  0x3b   :  { %v943_v14 = vld [vmem:[#allocation2] sm:$0xff]   ;;  %v722_v16 = vld [vmem:[#allocation7 + $0x30] sm:$0xff]   ;;  %v724_v18 = vld [vmem:[#allocation5 + $0x40] sm:$0xff]  }
  0x3c   :  { %v723_v17 = vld [vmem:[#allocation7 + $0x38] sm:$0xff]   ;;  %v725_v19 = vld [vmem:[#allocation5 + $0x48] sm:$0xff]   ;;  %v726_v20 = vld [vmem:[#allocation5 + $0x50] sm:$0xff]   ;;  %v65_v63 = vunpack.c.l.bf16 %v943_v14 }
  0x3d   :  { %620 = vmatpush3.bf16.msra.mxu0 %v708_v2  ;;  %640 = vmatpush3.bf16.msra.mxu1 %v717_v6  ;;  %v727_v21 = vld [vmem:[#allocation5 + $0x58] sm:$0xff]   ;;  %v728_v22 = vld [vmem:[#allocation5 + $0x60] sm:$0xff]   ;;  %v729_v23 = vld [vmem:[#allocation5 + $0x68] sm:$0xff]  }
  0x3e   :  { %621 = vmatprep.subr.bf16.mxu0 %v840_v0  ;;  %641 = vmatprep.subr.bf16.mxu1 %v840_v0  ;;  %v544_v24 = vld [vmem:[%s998_s2] ss:$0 sm:$0xff]  ;;  %v730_v34 = vld [vmem:[#allocation5 + $0x70] sm:$0xff]   ;;  %v732_v36 = vld [vmem:[#allocation7 + $0x40] sm:$0xff]  }
  0x3f   :  { %v731_v35 = vld [vmem:[#allocation5 + $0x78] sm:$0xff]   ;;  %v733_v37 = vld [vmem:[#allocation7 + $0x48] sm:$0xff]   ;;  %v734_v38 = vld [vmem:[#allocation7 + $0x50] sm:$0xff]  }
  0x40   :  { %v735_v39 = vld [vmem:[#allocation7 + $0x58] sm:$0xff]   ;;  %v736_v40 = vld [vmem:[#allocation7 + $0x60] sm:$0xff]   ;;  %v737_v41 = vld [vmem:[#allocation7 + $0x68] sm:$0xff]  }
  0x41   :  { %622 = vmatpush3.bf16.msra.mxu0 %v709_v3  ;;  %642 = vmatpush3.bf16.msra.mxu1 %v718_v8  ;;  %v554_v42 = vld [vmem:[%s1000_s4] ss:$0 sm:$0xff]  ;;  %v738_v50 = vld [vmem:[#allocation7 + $0x70] sm:$0xff]   ;;  %v563_v52 = vld [vmem:[%s998_s2 + $0x1] ss:$0 sm:$0xff]  ;;  %v66_v3 = vunpack.c.h.bf16 %v943_v14  ;;  %s842_s2 = smov [#allocation8]  }
  0x42   :  { %623 = vmatprep.subr.bf16.mxu0 %v840_v0  ;;  %643 = vmatprep.subr.bf16.mxu1 %v840_v0  ;;  %v739_v51 = vld [vmem:[#allocation7 + $0x78] sm:$0xff]   ;;  %s531_s11 = sshll.u32 %s842_s2, 4  ;;  %s532_s11 = int_to_ptr.vmem [resolvable:$true] %s531_s11 }
  0x43   :  { %v572_v62 = vld [vmem:[%s1000_s4 + $0x1] ss:$0 sm:$0xff]  ;;  %s807_s12 = scalar_lea.vmem %s532_s11, 256  ;;  %p812_p11 = scmp.lt.s32.totalorder %s532_s11, %s532_s11 }
  0x44   :  { %p808_p10 = scmp.ne.s32.totalorder %s532_s11, %s807_s12  ;;  %p813_p12 = scmp.lt.s32.totalorder %s807_s12, %s807_s12 }
  0x45   :  { %624 = vmatpush3.bf16.msra.mxu0 %v710_v5  ;;  %644 = vmatpush3.bf16.msra.mxu1 %v719_v10 }
  0x46   :  { %625 = vmatprep.subr.bf16.mxu0 %v840_v0  ;;  %645 = vmatprep.subr.bf16.mxu1 %v840_v0  ;;  %p814_p13 = por %p813_p12, %p812_p11 }
  0x48   :  { %p815_p0 = pnand %p814_p13, %p808_p10 }
  0x49   :  { %626 = vmatpush3.bf16.msra.mxu0 %v711_v7  ;;  %646 = vmatpush3.bf16.msra.mxu1 %v720_v12 }
  0x4a   :  { %627 = vmatprep.subr.bf16.mxu0 %v840_v0  ;;  %647 = vmatprep.subr.bf16.mxu1 %v840_v0 }
  0x4d   :  { %628 = vmatpush3.bf16.msra.mxu0 %v712_v9  ;;  %648 = vmatpush3.bf16.msra.mxu1 %v721_v15 }
  0x4e   :  { %629 = vmatprep.subr.bf16.mxu0 %v840_v0  ;;  %649 = vmatprep.subr.bf16.mxu1 %v840_v0 }
  0x51   :  { %630 = vmatpush3.bf16.msra.mxu0 %v713_v11  ;;  %650 = vmatpush3.bf16.msra.mxu1 %v722_v16 }
  0x52   :  { %631 = vmatprep.subr.bf16.mxu0 %v840_v0  ;;  %651 = vmatprep.subr.bf16.mxu1 %v840_v0 }
  0x55   :  { %632 = vmatpush3.bf16.msra.mxu0 %v714_v13  ;;  %652 = vmatpush3.bf16.msra.mxu1 %v723_v17 }
  0x56   :  { %657 = vmatprep.subr.bf16.mxu0 %v840_v0  ;;  %677 = vmatprep.subr.bf16.mxu1 %v840_v0 }
  0x58   :  { %634 = vmatmul.mubr.bf16.vlgmr.msra.gmra.mrb[0].mxu0 %v943_v14 }
  0x59   :  { %673 = vmatprep.mubr.msk.bf16.mxu0 %vm841_vm0, %v840_v0  ;;  %658 = vmatpush3.bf16.msra.mxu0 %v724_v18 }
  0x5a   :  { %659 = vmatprep.subr.bf16.mxu0 %v840_v0 }
  0x5d   :  { %660 = vmatpush3.bf16.msra.mxu0 %v725_v19 }
  0x5e   :  { %661 = vmatprep.subr.bf16.mxu0 %v840_v0 }
  0x61   :  { %662 = vmatpush3.bf16.msra.mxu0 %v726_v20 }
  0x62   :  { %663 = vmatprep.subr.bf16.mxu0 %v840_v0 }
  0x65   :  { %664 = vmatpush3.bf16.msra.mxu0 %v727_v21 }
  0x66   :  { %665 = vmatprep.subr.bf16.mxu0 %v840_v0 }
  0x69   :  { %666 = vmatpush3.bf16.msra.mxu0 %v728_v22 }
  0x6a   :  { %667 = vmatprep.subr.bf16.mxu0 %v840_v0 }
  0x6d   :  { %668 = vmatpush3.bf16.msra.mxu0 %v729_v23 }
  0x6e   :  { %669 = vmatprep.subr.bf16.mxu0 %v840_v0 }
  0x71   :  { %670 = vmatpush3.bf16.msra.mxu0 %v730_v34 }
  0x72   :  { %671 = vmatprep.subr.bf16.mxu0 %v840_v0 }
  0x75   :  { %672 = vmatpush3.bf16.msra.mxu0 %v731_v35 }
 0x12b   :  { %v176_v25 = vpop.f32.mrb[0].mxu0 }
 0x12c   :  { %v177_v26 = vadd.f32 %v544_v24, %v176_v25  ;;  %v635_v27 = vpop.f32.mrb[1].mxu0 }
 0x12d   :  { %v179_v28 = vpop.f32.mrb[2].mxu0 }
 0x12e   :  { %v180_v29 = vadd.f32 %v544_v24, %v179_v28  ;;  %v636_v30 = vpop.f32.mrb[3].mxu0  ;;  %v183_v31 = vmax.f32 %v177_v26, 0.0 }
 0x130   :  { %v184_v32 = vmax.f32 %v180_v29, 0.0 }
 0x132   :  { %v185_v33 = vpack.c.bf16 %v184_v32, %v183_v31 }
 0x134   :  { %654 = vmatmul.mubr.bf16.vlgmr.msra.gmra.mrb[0].mxu1 %v185_v33 }
 0x135   :  { %693 = vmatprep.mubr.msk.bf16.mxu1 %vm841_vm0, %v840_v0  ;;  %678 = vmatpush3.bf16.msra.mxu1 %v732_v36 }
 0x136   :  { %679 = vmatprep.subr.bf16.mxu1 %v840_v0 }
 0x139   :  { %680 = vmatpush3.bf16.msra.mxu1 %v733_v37 }
 0x13a   :  { %681 = vmatprep.subr.bf16.mxu1 %v840_v0 }
 0x13d   :  { %682 = vmatpush3.bf16.msra.mxu1 %v734_v38 }
 0x13e   :  { %683 = vmatprep.subr.bf16.mxu1 %v840_v0 }
 0x141   :  { %684 = vmatpush3.bf16.msra.mxu1 %v735_v39 }
 0x142   :  { %685 = vmatprep.subr.bf16.mxu1 %v840_v0 }
 0x145   :  { %686 = vmatpush3.bf16.msra.mxu1 %v736_v40 }
 0x146   :  { %687 = vmatprep.subr.bf16.mxu1 %v840_v0 }
 0x149   :  { %688 = vmatpush3.bf16.msra.mxu1 %v737_v41 }
 0x14a   :  { %689 = vmatprep.subr.bf16.mxu1 %v840_v0 }
 0x14d   :  { %690 = vmatpush3.bf16.msra.mxu1 %v738_v50 }
 0x14e   :  { %691 = vmatprep.subr.bf16.mxu1 %v840_v0 }
 0x151   :  { %692 = vmatpush3.bf16.msra.mxu1 %v739_v51 }
 0x207   :  { %v289_v43 = vpop.f32.mrb[0].mxu1 }
 0x208   :  { %v655_v44 = vpop.f32.mrb[1].mxu1  ;;  %v290_v46 = vadd.f32 %v554_v42, %v289_v43 }
 0x209   :  { %v292_v45 = vpop.f32.mrb[2].mxu1 }
 0x20a   :  { %v293_v47 = vadd.f32 %v554_v42, %v292_v45  ;;  %v656_v48 = vpop.f32.mrb[3].mxu1 }
 0x20c   :  { %v296_v49 = vpack.c.bf16 %v293_v47, %v290_v46 }
 0x20e   :  { %674 = vmatmul.mubr.bf16.vlgmr.msra.gmra.mrb[4].mxu0 %v296_v49 }
 0x2e1   :  { %v401_v53 = vpop.f32.mrb[4].mxu0 }
 0x2e2   :  { %v402_v54 = vadd.f32 %v563_v52, %v401_v53  ;;  %v675_v55 = vpop.f32.mrb[5].mxu0 }
 0x2e3   :  { %v404_v56 = vpop.f32.mrb[6].mxu0 }
 0x2e4   :  { %v405_v57 = vadd.f32 %v563_v52, %v404_v56  ;;  %v676_v58 = vpop.f32.mrb[7].mxu0  ;;  %v408_v59 = vmax.f32 %v402_v54, 0.0 }
 0x2e6   :  { %v409_v60 = vmax.f32 %v405_v57, 0.0 }
 0x2e8   :  { %v410_v61 = vpack.c.bf16 %v409_v60, %v408_v59 }
 0x2ea   :  { %694 = vmatmul.mubr.bf16.vlgmr.msra.gmra.mrb[4].mxu1 %v410_v61 }
 0x3bd   :  { %v515_v0 = vpop.f32.mrb[4].mxu1 }
 0x3be   :  { %v516_v1 = vadd.f32 %v572_v62, %v515_v0  ;;  %v695_v2 = vpop.f32.mrb[5].mxu1 }
 0x3bf   :  { %v518_v4 = vpop.f32.mrb[6].mxu1 }
 0x3c0   :  { %v522_v5 = vadd.f32 %v516_v1, %v65_v63  ;;  %v519_v6 = vadd.f32 %v572_v62, %v518_v4  ;;  %v696_v7 = vpop.f32.mrb[7].mxu1 }
 0x3c2   :  { %524 = vst [vmem:[#allocation8] sm:$0xff] %v522_v5  ;;  %v523_v8 = vadd.f32 %v519_v6, %v66_v3 }
 0x3c4   :  { %525 = vst [vmem:[#allocation8 + $0x8] sm:$0xff] %v523_v8 }
 0x3c5   :  { %818 = shalt.err (!%p815_p0)
}
 0x3c6   :  { %s819_s14 = scalar_lea.hbm %s1001_s5, 256 }
 0x3c7   :  { %p820_p1 = scmp.ne.s32.totalorder %s1001_s5, %s819_s14  ;;  %p823_p2 = scmp.lt.u32.totalorder %s819_s14, %s1001_s5 }
 0x3c9   :  { %p825_p3 = pnand %p823_p2, %p820_p1 }
 0x3cb   :  { %828 = shalt.err (!%p825_p3)
}
 0x3cc   :  { %s843_s18 = smov 128   ;;  %s844_s19 = smov 8  }
 0x3cd   :  { %537 = dma.vmem_to_hbm [thread:$0]  %s532_s11, 256, %s1001_s5, [#allocation4], %s843_s18, %s843_s18, %s844_s19  }
 0x3ce   :  { %833 = dma.done.wait [#allocation4], 256  }
 0x3cf   :  { %834 = vsyncadd [#allocation4], 4294967040 }
 0x3d0   :  { %541 = vsyncpa [#allocation3], 1 }
 0x3d1   :  { %542 = vsyncpa [#allocation6], 1 }
 0x3d2   :  { %543 = vsyncpa [#allocation4], 1 }

</bundles_post_ra>
